<compile_context>
chip_gen: v7x
topology: tpu7x:2x2x1
jax: 0.10.0
libtpu: 0.0.40
codegen_flags: <defaults>
</compile_context>

<pallas_src>
import functools

import jax
import jax.numpy as jnp
import numpy as np
from jax import lax
from jax.experimental import pallas as pl
from jax.experimental.pallas import tpu as pltpu

LEAKY_SLOPE = 0.1           # matches PolicyNetwork's leaky_slope = 0.1
CONV_K = 21
CONV_STRIDE = 20
CONV_PAD = 10
CONV_OUT_CH = 4


def _round_up(x, m):
    return (x + m - 1) // m * m


def _conv_out_len(L):
    return (L + 2 * CONV_PAD - CONV_K) // CONV_STRIDE + 1


def _padded_scan_len(L):
    # conv needs L + 2*pad samples; round lanes up to a multiple of 128.
    return _round_up(L + 2 * CONV_PAD, 128)


def _leaky(x):
    return jnp.where(x > 0, x, LEAKY_SLOPE * x)


def _softplus(x):
    # PyTorch Softplus(beta=1, threshold=20), numerically stable.
    return jnp.where(x > 20.0, x, jnp.log1p(jnp.exp(jnp.minimum(x, 20.0))))


# --------------------------------------------------------------------------- kernel
def _policy_kernel(x_ref, obs_ref,
                   wconv_ref, bconv_ref,
                   w1_ref, b1_ref,
                   w2_ref, b2_ref,
                   w3a_ref, w3b_ref, b3_ref,
                   wh_ref, bh_ref,
                   out_ref, *, n_actions):
    f32 = jnp.float32
    cdt = w1_ref.dtype          # MXU compute dtype (bf16 or f32)

    # scan_network: Conv1d (as one matmul on the padded scan, output already in
    # channel-major flatten order) -> LeakyReLU -> Linear(128, 128)
    conv = _leaky(jnp.dot(x_ref[...], wconv_ref[...], preferred_element_type=f32)
                  + bconv_ref[...])
    scan_feat = (jnp.dot(conv.astype(cdt), w1_ref[...], preferred_element_type=f32)
                 + b1_ref[...])

    # observation_network: Linear(obs_dims, 128)
    obs_feat = (jnp.dot(obs_ref[...], w2_ref[...], preferred_element_type=f32)
                + b2_ref[...])

    # base_network: LeakyReLU -> Linear(256, 256) -> LeakyReLU.
    # concat([scan_feat, obs_feat]) @ W3 is split as W3 = [W3a; W3b] (no concat).
    h = (jnp.dot(_leaky(scan_feat).astype(cdt), w3a_ref[...], preferred_element_type=f32)
         + jnp.dot(_leaky(obs_feat).astype(cdt), w3b_ref[...], preferred_element_type=f32)
         + b3_ref[...])
    base = _leaky(h)

    # Fused heads: single matmul into one lane-dense 128-wide output block.
    head = (jnp.dot(base.astype(cdt), wh_ref[...], preferred_element_type=f32)
            + bh_ref[...])
    lane = lax.broadcasted_iota(jnp.int32, head.shape, 1)
    out_ref[...] = jnp.where(lane < n_actions, jnp.tanh(head), _softplus(head))


# ----------------------------------------------------------------- one-time packing
def pack_params(params, scan_dims, dtype=jnp.bfloat16):
    """Pack PyTorch-layout params into kernel layout ONCE (hoisted out of forward)."""
    (w_conv, b_conv, w1, b1, w2, b2, w3, b3, wm, bm, ws, bs) = params
    T = _conv_out_len(scan_dims)
    assert CONV_OUT_CH * T == 128, "Conv1d output must flatten to 128 features"
    Lp = _padded_scan_len(scan_dims)
    n = wm.shape[0]
    head_w = max(128, _round_up(2 * n, 128))
    f32 = jnp.float32

    # Conv-as-matmul weight acting directly on the padded scan:
    #   Wconv[l, c*T + t] = w_conv[c, 0, l - t*stride]  if 0 <= l - t*stride < K else 0
    l_idx = jnp.arange(Lp)[:, None]          # (Lp, 1)
    t_idx = jnp.arange(T)[None, :]           # (1, T)
    k = l_idx - CONV_STRIDE * t_idx          # (Lp, T)
    valid = (k >= 0) & (k < CONV_K)
    taps = w_conv[:, 0, :]                   # (C, K)
    wk = taps[:, jnp.clip(k, 0, CONV_K - 1)] * valid          # (C, Lp, T)
    wconv_mat = jnp.transpose(wk, (1, 0, 2)).reshape(Lp, CONV_OUT_CH * T)
    bconv_flat = jnp.repeat(b_conv, T)[None, :]               # (1, 128), index c*T + t

    # Fused heads: [tanh head | softplus head | zero pad] -> (256, head_w)
    wh = jnp.zeros((256, head_w), dtype)
    wh = wh.at[:, :n].set(wm.T.astype(dtype))
    wh = wh.at[:, n:2 * n].set(ws.T.astype(dtype))
    bh = jnp.zeros((head_w,), f32).at[:n].set(bm).at[n:2 * n].set(bs)

    w3t = w3.T
    return (wconv_mat.astype(dtype), bconv_flat.astype(f32),
            w1.T.astype(dtype), b1[None, :].astype(f32),
            w2.T.astype(dtype), b2[None, :].astype(f32),
            w3t[:128, :].astype(dtype), w3t[128:, :].astype(dtype),
            b3[None, :].astype(f32),
            wh, bh[None, :])


# ----------------------------------------------------------------------- forward
def policy_forward(scan, observation, packed, *, n_actions, block_b=None):
    """Forward pass. `packed` comes from pack_params (call it once, reuse)."""
    B, _, L = scan.shape
    obs_dims = observation.shape[1]
    Lp = _padded_scan_len(L)
    cdt = packed[0].dtype
    head_w = packed[-2].shape[1]

    # Batch tile: 128 rows fills the v5e MXU; pass block_b=256 on v6e/v7x.
    if block_b is None:
        block_b = 128 if B >= 128 else _round_up(B, 8)
    Bp = _round_up(B, block_b)
    num_tiles = Bp // block_b

    # Glue: contiguous zero-pad only (no gather, no per-call weight packing);
    # cast activations to the matmul dtype (bf16 halves activation HBM traffic).
    x = jnp.pad(scan[:, 0, :], ((0, Bp - B), (CONV_PAD, Lp - L - CONV_PAD))).astype(cdt)
    obs = jnp.pad(observation, ((0, Bp - B), (0, 0))).astype(cdt)

    act_spec = lambda width: pl.BlockSpec((block_b, width), lambda i: (i, 0))
    const_spec = lambda a: pl.BlockSpec(a.shape, lambda i: (0, 0))  # weights stay resident

    out = pl.pallas_call(
        functools.partial(_policy_kernel, n_actions=n_actions),
        out_shape=jax.ShapeDtypeStruct((Bp, head_w), jnp.float32),
        grid=(num_tiles,),
        in_specs=[act_spec(Lp), act_spec(obs_dims)] + [const_spec(a) for a in packed],
        out_specs=pl.BlockSpec((block_b, head_w), lambda i: (i, 0)),
        compiler_params=pltpu.CompilerParams(dimension_semantics=("parallel",)),
    )(x, obs, *packed)

    mean = out[:B, :n_actions]
    std = out[:B, n_actions:2 * n_actions]
    return mean, std


# ---------------------------------------------------------------------- reference
def ref_forward(scan, observation, params):
    """Pure-JAX f32 reference mirroring the PyTorch forward exactly."""
    (w_conv, b_conv, w1, b1, w2, b2, w3, b3, wm, bm, ws, bs) = params
    B = scan.shape[0]
    conv = lax.conv_general_dilated(
        scan, w_conv, window_strides=(CONV_STRIDE,),
        padding=((CONV_PAD, CONV_PAD),),
        dimension_numbers=('NCH', 'OIH', 'NCH')) + b_conv[None, :, None]
    x = _leaky(conv).reshape(B, -1)                  # Flatten: channel-major (B, 4*T)
    scan_feat = x @ w1.T + b1
    obs_feat = observation @ w2.T + b2
    state = jnp.concatenate([scan_feat, obs_feat], axis=1)
    base = _leaky(_leaky(state) @ w3.T + b3)
    mean = jnp.tanh(base @ wm.T + bm)
    std = jax.nn.softplus(base @ ws.T + bs)
    return mean, std


if __name__ == "__main__":
    B = 2
    scan_dims = 640          # -> conv output length 32; 4*32 = 128 flattened features
    observation_dims = 8
    n_actions = 4

    key = jax.random.PRNGKey(0)
    ks = jax.random.split(key, 16)
    s = 0.1
    params = (
        jax.random.normal(ks[0], (CONV_OUT_CH, 1, CONV_K), jnp.float32) * s,   # conv weight
        jax.random.normal(ks[1], (CONV_OUT_CH,), jnp.float32) * s,             # conv bias
        jax.random.normal(ks[2], (128, 128), jnp.float32) * s,                 # scan Linear
        jax.random.normal(ks[3], (128,), jnp.float32) * s,
        jax.random.normal(ks[4], (128, observation_dims), jnp.float32) * s,    # obs Linear
        jax.random.normal(ks[5], (128,), jnp.float32) * s,
        jax.random.normal(ks[6], (256, 256), jnp.float32) * s,                 # base Linear
        jax.random.normal(ks[7], (256,), jnp.float32) * s,
        jax.random.normal(ks[8], (n_actions, 256), jnp.float32) * s,           # mean head
        jax.random.normal(ks[9], (n_actions,), jnp.float32) * s,
        jax.random.normal(ks[10], (n_actions, 256), jnp.float32) * s,          # std head
        jax.random.normal(ks[11], (n_actions,), jnp.float32) * s,
    )

    scan = jax.random.normal(ks[12], (B, 1, scan_dims), jnp.float32)
    observation = jax.random.normal(ks[13], (B, observation_dims), jnp.float32)

    fwd = jax.jit(policy_forward, static_argnames=("n_actions", "block_b"))
    mean_ref, std_ref = ref_forward(scan, observation, params)

    # Optimized path: bf16 weights / matmul inputs (f32 accumulation + activations).
    packed_bf16 = pack_params(params, scan_dims)                       # packed ONCE
    mean, std = fwd(scan, observation, packed_bf16, n_actions=n_actions)
    jax.block_until_ready((mean, std))
    np.testing.assert_allclose(np.asarray(mean), np.asarray(mean_ref), rtol=5e-2, atol=5e-2)
    np.testing.assert_allclose(np.asarray(std), np.asarray(std_ref), rtol=5e-2, atol=5e-2)

    # f32-packed path: exact structural check against the PyTorch-equivalent reference.
    packed_f32 = pack_params(params, scan_dims, dtype=jnp.float32)
    mean32, std32 = fwd(scan, observation, packed_f32, n_actions=n_actions)
    jax.block_until_ready((mean32, std32))
    np.testing.assert_allclose(np.asarray(mean32), np.asarray(mean_ref), rtol=1e-4, atol=1e-4)
    np.testing.assert_allclose(np.asarray(std32), np.asarray(std_ref), rtol=1e-4, atol=1e-4)

    assert mean.shape == (B, n_actions) and std.shape == (B, n_actions)
    print("KERNEL_OK")
</pallas_src>

<mosaic_0001>
module attributes {stable_mosaic.version = 11 : i64} {
  func.func @_policy_kernel(%arg0: i32, %arg1: memref<8x768xbf16, #tpu.memory_space<vmem>>, %arg2: memref<8x8xbf16, #tpu.memory_space<vmem>>, %arg3: memref<768x128xbf16, #tpu.memory_space<vmem>>, %arg4: memref<1x128xf32, #tpu.memory_space<vmem>>, %arg5: memref<128x128xbf16, #tpu.memory_space<vmem>>, %arg6: memref<1x128xf32, #tpu.memory_space<vmem>>, %arg7: memref<8x128xbf16, #tpu.memory_space<vmem>>, %arg8: memref<1x128xf32, #tpu.memory_space<vmem>>, %arg9: memref<128x256xbf16, #tpu.memory_space<vmem>>, %arg10: memref<128x256xbf16, #tpu.memory_space<vmem>>, %arg11: memref<1x256xf32, #tpu.memory_space<vmem>>, %arg12: memref<256x128xbf16, #tpu.memory_space<vmem>>, %arg13: memref<1x128xf32, #tpu.memory_space<vmem>>, %arg14: memref<8x128xf32, #tpu.memory_space<vmem>>) attributes {dimension_semantics = [#tpu.dimension_semantics<parallel>], iteration_bounds = array<i64: 1>, scalar_prefetch = 0 : i64, scratch_operands = 0 : i64, tpu.core_type = #tpu.core_type<tc>, window_params = [{transform_indices = @transform_0, window_bounds = array<i64: 8, 768>}, {transform_indices = @transform_1, window_bounds = array<i64: 8, 8>}, {pipeline_mode = #tpu.pipeline_mode<synchronous>, transform_indices = @transform_2, window_bounds = array<i64: 768, 128>}, {pipeline_mode = #tpu.pipeline_mode<synchronous>, transform_indices = @transform_3, window_bounds = array<i64: 1, 128>}, {pipeline_mode = #tpu.pipeline_mode<synchronous>, transform_indices = @transform_4, window_bounds = array<i64: 128, 128>}, {pipeline_mode = #tpu.pipeline_mode<synchronous>, transform_indices = @transform_5, window_bounds = array<i64: 1, 128>}, {pipeline_mode = #tpu.pipeline_mode<synchronous>, transform_indices = @transform_6, window_bounds = array<i64: 8, 128>}, {pipeline_mode = #tpu.pipeline_mode<synchronous>, transform_indices = @transform_7, window_bounds = array<i64: 1, 128>}, {pipeline_mode = #tpu.pipeline_mode<synchronous>, transform_indices = @transform_8, window_bounds = array<i64: 128, 256>}, {pipeline_mode = #tpu.pipeline_mode<synchronous>, transform_indices = @transform_9, window_bounds = array<i64: 128, 256>}, {pipeline_mode = #tpu.pipeline_mode<synchronous>, transform_indices = @transform_10, window_bounds = array<i64: 1, 256>}, {pipeline_mode = #tpu.pipeline_mode<synchronous>, transform_indices = @transform_11, window_bounds = array<i64: 256, 128>}, {pipeline_mode = #tpu.pipeline_mode<synchronous>, transform_indices = @transform_12, window_bounds = array<i64: 1, 128>}, {transform_indices = @transform_13, window_bounds = array<i64: 8, 128>}]} {
    %c0 = arith.constant 0 : index
    %c0_0 = arith.constant 0 : index
    %0 = vector.load %arg1[%c0, %c0_0] : memref<8x768xbf16, #tpu.memory_space<vmem>>, vector<8x768xbf16>
    %c0_1 = arith.constant 0 : index
    %c0_2 = arith.constant 0 : index
    %1 = vector.load %arg3[%c0_1, %c0_2] : memref<768x128xbf16, #tpu.memory_space<vmem>>, vector<768x128xbf16>
    %cst = arith.constant dense<0.000000e+00> : vector<8x128xf32>
    %2 = tpu.matmul %0, %1, %cst {dimension_numbers = #tpu.dot_dimension_numbers<[1], [0], [0], [1], [0, 0, 1, 1], [], []>} : vector<8x768xbf16>, vector<768x128xbf16>, vector<8x128xf32> -> vector<8x128xf32>
    %c0_3 = arith.constant 0 : index
    %c0_4 = arith.constant 0 : index
    %3 = vector.load %arg4[%c0_3, %c0_4] : memref<1x128xf32, #tpu.memory_space<vmem>>, vector<1x128xf32>
    %4 = vector.broadcast %3 : vector<1x128xf32> to vector<8x128xf32>
    %5 = arith.addf %2, %4 : vector<8x128xf32>
    %cst_5 = arith.constant 0.000000e+00 : f32
    %6 = vector.broadcast %cst_5 : f32 to vector<8x128xf32>
    %7 = arith.cmpf ogt, %5, %6 : vector<8x128xf32>
    %cst_6 = arith.constant 1.000000e-01 : f32
    %8 = vector.broadcast %cst_6 : f32 to vector<8x128xf32>
    %9 = arith.mulf %8, %5 : vector<8x128xf32>
    %10 = arith.select %7, %5, %9 : vector<8x128xi1>, vector<8x128xf32>
    %11 = arith.truncf %10 : vector<8x128xf32> to vector<8x128xbf16>
    %c0_7 = arith.constant 0 : index
    %c0_8 = arith.constant 0 : index
    %12 = vector.load %arg5[%c0_7, %c0_8] : memref<128x128xbf16, #tpu.memory_space<vmem>>, vector<128x128xbf16>
    %cst_9 = arith.constant dense<0.000000e+00> : vector<8x128xf32>
    %13 = tpu.matmul %11, %12, %cst_9 {dimension_numbers = #tpu.dot_dimension_numbers<[1], [0], [0], [1], [0, 0, 1, 1], [], []>} : vector<8x128xbf16>, vector<128x128xbf16>, vector<8x128xf32> -> vector<8x128xf32>
    %c0_10 = arith.constant 0 : index
    %c0_11 = arith.constant 0 : index
    %14 = vector.load %arg6[%c0_10, %c0_11] : memref<1x128xf32, #tpu.memory_space<vmem>>, vector<1x128xf32>
    %15 = vector.broadcast %14 : vector<1x128xf32> to vector<8x128xf32>
    %16 = arith.addf %13, %15 : vector<8x128xf32>
    %c0_12 = arith.constant 0 : index
    %c0_13 = arith.constant 0 : index
    %17 = vector.load %arg2[%c0_12, %c0_13] : memref<8x8xbf16, #tpu.memory_space<vmem>>, vector<8x8xbf16>
    %c0_14 = arith.constant 0 : index
    %c0_15 = arith.constant 0 : index
    %18 = vector.load %arg7[%c0_14, %c0_15] : memref<8x128xbf16, #tpu.memory_space<vmem>>, vector<8x128xbf16>
    %cst_16 = arith.constant dense<0.000000e+00> : vector<8x128xf32>
    %19 = tpu.matmul %17, %18, %cst_16 {dimension_numbers = #tpu.dot_dimension_numbers<[1], [0], [0], [1], [0, 0, 1, 1], [], []>} : vector<8x8xbf16>, vector<8x128xbf16>, vector<8x128xf32> -> vector<8x128xf32>
    %c0_17 = arith.constant 0 : index
    %c0_18 = arith.constant 0 : index
    %20 = vector.load %arg8[%c0_17, %c0_18] : memref<1x128xf32, #tpu.memory_space<vmem>>, vector<1x128xf32>
    %21 = vector.broadcast %20 : vector<1x128xf32> to vector<8x128xf32>
    %22 = arith.addf %19, %21 : vector<8x128xf32>
    %cst_19 = arith.constant 0.000000e+00 : f32
    %23 = vector.broadcast %cst_19 : f32 to vector<8x128xf32>
    %24 = arith.cmpf ogt, %16, %23 : vector<8x128xf32>
    %cst_20 = arith.constant 1.000000e-01 : f32
    %25 = vector.broadcast %cst_20 : f32 to vector<8x128xf32>
    %26 = arith.mulf %25, %16 : vector<8x128xf32>
    %27 = arith.select %24, %16, %26 : vector<8x128xi1>, vector<8x128xf32>
    %28 = arith.truncf %27 : vector<8x128xf32> to vector<8x128xbf16>
    %c0_21 = arith.constant 0 : index
    %c0_22 = arith.constant 0 : index
    %29 = vector.load %arg9[%c0_21, %c0_22] : memref<128x256xbf16, #tpu.memory_space<vmem>>, vector<128x256xbf16>
    %cst_23 = arith.constant dense<0.000000e+00> : vector<8x256xf32>
    %30 = tpu.matmul %28, %29, %cst_23 {dimension_numbers = #tpu.dot_dimension_numbers<[1], [0], [0], [1], [0, 0, 1, 1], [], []>} : vector<8x128xbf16>, vector<128x256xbf16>, vector<8x256xf32> -> vector<8x256xf32>
    %cst_24 = arith.constant 0.000000e+00 : f32
    %31 = vector.broadcast %cst_24 : f32 to vector<8x128xf32>
    %32 = arith.cmpf ogt, %22, %31 : vector<8x128xf32>
    %cst_25 = arith.constant 1.000000e-01 : f32
    %33 = vector.broadcast %cst_25 : f32 to vector<8x128xf32>
    %34 = arith.mulf %33, %22 : vector<8x128xf32>
    %35 = arith.select %32, %22, %34 : vector<8x128xi1>, vector<8x128xf32>
    %36 = arith.truncf %35 : vector<8x128xf32> to vector<8x128xbf16>
    %c0_26 = arith.constant 0 : index
    %c0_27 = arith.constant 0 : index
    %37 = vector.load %arg10[%c0_26, %c0_27] : memref<128x256xbf16, #tpu.memory_space<vmem>>, vector<128x256xbf16>
    %cst_28 = arith.constant dense<0.000000e+00> : vector<8x256xf32>
    %38 = tpu.matmul %36, %37, %cst_28 {dimension_numbers = #tpu.dot_dimension_numbers<[1], [0], [0], [1], [0, 0, 1, 1], [], []>} : vector<8x128xbf16>, vector<128x256xbf16>, vector<8x256xf32> -> vector<8x256xf32>
    %39 = arith.addf %30, %38 : vector<8x256xf32>
    %c0_29 = arith.constant 0 : index
    %c0_30 = arith.constant 0 : index
    %40 = vector.load %arg11[%c0_29, %c0_30] : memref<1x256xf32, #tpu.memory_space<vmem>>, vector<1x256xf32>
    %41 = vector.broadcast %40 : vector<1x256xf32> to vector<8x256xf32>
    %42 = arith.addf %39, %41 : vector<8x256xf32>
    %cst_31 = arith.constant 0.000000e+00 : f32
    %43 = vector.broadcast %cst_31 : f32 to vector<8x256xf32>
    %44 = arith.cmpf ogt, %42, %43 : vector<8x256xf32>
    %cst_32 = arith.constant 1.000000e-01 : f32
    %45 = vector.broadcast %cst_32 : f32 to vector<8x256xf32>
    %46 = arith.mulf %45, %42 : vector<8x256xf32>
    %47 = arith.select %44, %42, %46 : vector<8x256xi1>, vector<8x256xf32>
    %48 = arith.truncf %47 : vector<8x256xf32> to vector<8x256xbf16>
    %c0_33 = arith.constant 0 : index
    %c0_34 = arith.constant 0 : index
    %49 = vector.load %arg12[%c0_33, %c0_34] : memref<256x128xbf16, #tpu.memory_space<vmem>>, vector<256x128xbf16>
    %cst_35 = arith.constant dense<0.000000e+00> : vector<8x128xf32>
    %50 = tpu.matmul %48, %49, %cst_35 {dimension_numbers = #tpu.dot_dimension_numbers<[1], [0], [0], [1], [0, 0, 1, 1], [], []>} : vector<8x256xbf16>, vector<256x128xbf16>, vector<8x128xf32> -> vector<8x128xf32>
    %c0_36 = arith.constant 0 : index
    %c0_37 = arith.constant 0 : index
    %51 = vector.load %arg13[%c0_36, %c0_37] : memref<1x128xf32, #tpu.memory_space<vmem>>, vector<1x128xf32>
    %52 = vector.broadcast %51 : vector<1x128xf32> to vector<8x128xf32>
    %53 = arith.addf %50, %52 : vector<8x128xf32>
    %54 = tpu.iota {dimensions = array<i32: 1>} : vector<8x128xi32>
    %c4_i32 = arith.constant 4 : i32
    %55 = vector.broadcast %c4_i32 : i32 to vector<8x128xi32>
    %56 = arith.cmpi slt, %54, %55 : vector<8x128xi32>
    %57 = math.tanh %53 : vector<8x128xf32>
    %cst_38 = arith.constant 2.000000e+01 : f32
    %58 = vector.broadcast %cst_38 : f32 to vector<8x128xf32>
    %59 = arith.cmpf ogt, %53, %58 : vector<8x128xf32>
    %cst_39 = arith.constant 2.000000e+01 : f32
    %60 = vector.broadcast %cst_39 : f32 to vector<8x128xf32>
    %61 = arith.minimumf %53, %60 : vector<8x128xf32>
    %62 = math.exp %61 : vector<8x128xf32>
    %63 = math.log1p %62 : vector<8x128xf32>
    %64 = arith.select %59, %53, %63 : vector<8x128xi1>, vector<8x128xf32>
    %65 = arith.select %56, %57, %64 : vector<8x128xi1>, vector<8x128xf32>
    %c0_40 = arith.constant 0 : index
    %c0_41 = arith.constant 0 : index
    %66 = vector.load %arg14[%c0_40, %c0_41] : memref<8x128xf32, #tpu.memory_space<vmem>>, vector<8x128xf32>
    tpu.vector_store %arg14[%c0_40, %c0_41], %65 {strides = array<i32>} : memref<8x128xf32, #tpu.memory_space<vmem>>, vector<8x128xf32>,
    return
  }
  func.func @transform_0(%arg0: i32) -> (i32, i32) {
    %c0_i32 = arith.constant 0 : i32
    %c0_i32_0 = arith.constant 0 : i32
    return %arg0, %c0_i32 : i32, i32
  }
  func.func @transform_1(%arg0: i32) -> (i32, i32) {
    %c0_i32 = arith.constant 0 : i32
    %c0_i32_0 = arith.constant 0 : i32
    return %arg0, %c0_i32 : i32, i32
  }
  func.func @transform_2(%arg0: i32) -> (i32, i32) {
    %c0_i32 = arith.constant 0 : i32
    %c0_i32_0 = arith.constant 0 : i32
    %c0_i32_1 = arith.constant 0 : i32
    return %c0_i32, %c0_i32_0 : i32, i32
  }
  func.func @transform_3(%arg0: i32) -> (i32, i32) {
    %c0_i32 = arith.constant 0 : i32
    %c0_i32_0 = arith.constant 0 : i32
    %c0_i32_1 = arith.constant 0 : i32
    return %c0_i32, %c0_i32_0 : i32, i32
  }
  func.func @transform_4(%arg0: i32) -> (i32, i32) {
    %c0_i32 = arith.constant 0 : i32
    %c0_i32_0 = arith.constant 0 : i32
    %c0_i32_1 = arith.constant 0 : i32
    return %c0_i32, %c0_i32_0 : i32, i32
  }
  func.func @transform_5(%arg0: i32) -> (i32, i32) {
    %c0_i32 = arith.constant 0 : i32
    %c0_i32_0 = arith.constant 0 : i32
    %c0_i32_1 = arith.constant 0 : i32
    return %c0_i32, %c0_i32_0 : i32, i32
  }
  func.func @transform_6(%arg0: i32) -> (i32, i32) {
    %c0_i32 = arith.constant 0 : i32
    %c0_i32_0 = arith.constant 0 : i32
    %c0_i32_1 = arith.constant 0 : i32
    return %c0_i32, %c0_i32_0 : i32, i32
  }
  func.func @transform_7(%arg0: i32) -> (i32, i32) {
    %c0_i32 = arith.constant 0 : i32
    %c0_i32_0 = arith.constant 0 : i32
    %c0_i32_1 = arith.constant 0 : i32
    return %c0_i32, %c0_i32_0 : i32, i32
  }
  func.func @transform_8(%arg0: i32) -> (i32, i32) {
    %c0_i32 = arith.constant 0 : i32
    %c0_i32_0 = arith.constant 0 : i32
    %c0_i32_1 = arith.constant 0 : i32
    return %c0_i32, %c0_i32_0 : i32, i32
  }
  func.func @transform_9(%arg0: i32) -> (i32, i32) {
    %c0_i32 = arith.constant 0 : i32
    %c0_i32_0 = arith.constant 0 : i32
    %c0_i32_1 = arith.constant 0 : i32
    return %c0_i32, %c0_i32_0 : i32, i32
  }
  func.func @transform_10(%arg0: i32) -> (i32, i32) {
    %c0_i32 = arith.constant 0 : i32
    %c0_i32_0 = arith.constant 0 : i32
    %c0_i32_1 = arith.constant 0 : i32
    return %c0_i32, %c0_i32_0 : i32, i32
  }
  func.func @transform_11(%arg0: i32) -> (i32, i32) {
    %c0_i32 = arith.constant 0 : i32
    %c0_i32_0 = arith.constant 0 : i32
    %c0_i32_1 = arith.constant 0 : i32
    return %c0_i32, %c0_i32_0 : i32, i32
  }
  func.func @transform_12(%arg0: i32) -> (i32, i32) {
    %c0_i32 = arith.constant 0 : i32
    %c0_i32_0 = arith.constant 0 : i32
    %c0_i32_1 = arith.constant 0 : i32
    return %c0_i32, %c0_i32_0 : i32, i32
  }
  func.func @transform_13(%arg0: i32) -> (i32, i32) {
    %c0_i32 = arith.constant 0 : i32
    %c0_i32_0 = arith.constant 0 : i32
    return %arg0, %c0_i32 : i32, i32
  }
}

</mosaic_0001>

<bundles_post_ra>
// kernel: policy_forward.1
= control target key start
LH: loop header
LB: loop body
LE: loop exit
PB: predicated region body
PF: predicated region fallthrough
CT: control target
= control target key end

     0   :  { %18 = vsyncpa [#allocation3], 0  ;;  %s1995_s0 = inlined_call_operand.vmem [shape: bf16[8,768], index: 0, kind: input, shape index: {}]   ;;  %s1996_s1 = inlined_call_operand.vmem [shape: bf16[8,8], index: 1, kind: input, shape index: {}]   ;;  %s1997_s2 = inlined_call_operand.hbm [shape: bf16[768,128], index: 2, kind: input, shape index: {}]   ;;  %s1998_s3 = inlined_call_operand.vmem [shape: f32[1,128], index: 3, kind: input, shape index: {}]   ;;  %s1999_s4 = inlined_call_operand.vmem [shape: bf16[128,128], index: 4, kind: input, shape index: {}]   ;;  %s2000_s5 = inlined_call_operand.vmem [shape: f32[1,128], index: 5, kind: input, shape index: {}]   ;;  %s2001_s6 = inlined_call_operand.vmem [shape: bf16[8,128], index: 6, kind: input, shape index: {}]   ;;  %s2002_s7 = inlined_call_operand.vmem [shape: f32[1,128], index: 7, kind: input, shape index: {}]   ;;  %s2003_s8 = inlined_call_operand.hbm [shape: bf16[128,256], index: 8, kind: input, shape index: {}]   ;;  %s2004_s9 = inlined_call_operand.hbm [shape: bf16[128,256], index: 9, kind: input, shape index: {}]   ;;  %s2005_s10 = inlined_call_operand.vmem [shape: f32[1,256], index: 10, kind: input, shape index: {}]   ;;  %s2006_s11 = inlined_call_operand.hbm [shape: bf16[256,128], index: 11, kind: input, shape index: {}]   ;;  %s2007_s12 = inlined_call_operand.vmem [shape: f32[1,128], index: 12, kind: input, shape index: {}]   ;;  %s2008_s13 = inlined_call_operand.vmem [shape: f32[8,128], index: 13, kind: output, shape index: {}]  }
   0x1   :  { %19 = vsyncpa [#allocation5], 0 }
   0x2   :  { %20 = vsyncpa [#allocation8], 0  ;;  %s1790_s25 = smov [#allocation4]   ;;  %s1696_s29 = scalar_lea.hbm %s2003_s8, 2048 }
   0x3   :  { %s52_s26 = sshll.u32 %s1790_s25, 4  ;;  %p1697_p0 = scmp.ne.s32.totalorder %s2003_s8, %s1696_s29  ;;  %s53_s26 = int_to_ptr.vmem [resolvable:$true] %s52_s26 }
   0x4   :  { %p1700_p1 = scmp.lt.u32.totalorder %s1696_s29, %s2003_s8 }
   0x6   :  { %p1702_p2 = pnand %p1700_p1, %p1697_p0 }
   0x8   :  { %1705 = shalt.err (!%p1702_p2)
}
   0x9   :  { %s1706_s17 = scalar_lea.vmem %s53_s26, 2048  ;;  %p1711_p4 = scmp.lt.s32.totalorder %s53_s26, %s53_s26 }
   0xa   :  { %p1707_p3 = scmp.ne.s32.totalorder %s53_s26, %s1706_s17  ;;  %p1712_p5 = scmp.lt.s32.totalorder %s1706_s17, %s1706_s17 }
   0xc   :  { %p1713_p6 = por %p1712_p5, %p1711_p4 }
   0xe   :  { %p1714_p7 = pnand %p1713_p6, %p1707_p3 }
  0x10   :  { %1717 = shalt.err (!%p1714_p7)
}
  0x11   :  { %s1791_s18 = smov 128   ;;  %s1792_s19 = smov 8  }
  0x12   :  { %58 = dma.hbm_to_vmem [thread:$0]  %s2003_s8, 2048, %s53_s26, [#allocation5], %s1791_s18, %s1791_s18, %s1792_s19  }
  0x13   :  { %s1793_s22 = smov [#allocation2]   ;;  %s1718_s27 = scalar_lea.hbm %s1997_s2, 6144 }
  0x14   :  { %s30_s23 = sshll.u32 %s1793_s22, 4  ;;  %p1719_p8 = scmp.ne.s32.totalorder %s1997_s2, %s1718_s27  ;;  %s31_s23 = int_to_ptr.vmem [resolvable:$true] %s30_s23 }
  0x15   :  { %p1722_p9 = scmp.lt.u32.totalorder %s1718_s27, %s1997_s2 }
  0x17   :  { %p1724_p10 = pnand %p1722_p9, %p1719_p8 }
  0x19   :  { %1727 = shalt.err (!%p1724_p10)
}
  0x1a   :  { %s1728_s15 = scalar_lea.vmem %s31_s23, 6144  ;;  %p1733_p12 = scmp.lt.s32.totalorder %s31_s23, %s31_s23 }
  0x1b   :  { %p1729_p11 = scmp.ne.s32.totalorder %s31_s23, %s1728_s15  ;;  %p1734_p13 = scmp.lt.s32.totalorder %s1728_s15, %s1728_s15 }
  0x1d   :  { %p1735_p0 = por %p1734_p13, %p1733_p12 }
  0x1f   :  { %p1736_p1 = pnand %p1735_p0, %p1729_p11 }
  0x21   :  { %1739 = shalt.err (!%p1736_p1)
}
  0x22   :  { %s1794_s8 = smov 64   ;;  %s1795_s26 = smov 4  }
  0x23   :  { %36 = dma.hbm_to_vmem [thread:$0]  %s1997_s2, 6144, %s31_s23, [#allocation3], %s1794_s8, %s1794_s8, %s1795_s26  }
  0x24   :  { %s1796_s20 = smov [#allocation6]   ;;  %s1797_s22 = smov [#allocation7]  }
  0x25   :  { %s64_s21 = sshll.u32 %s1796_s20, 4  ;;  %s78_s24 = sshll.u32 %s1797_s22, 4  ;;  %s65_s21 = int_to_ptr.vmem [resolvable:$true] %s64_s21  ;;  %s1901_s24 = int_to_ptr.vmem [resolvable:$true] %s78_s24 }
  0x26   :  { %s1740_s28 = scalar_lea.hbm %s2004_s9, 2048 }
  0x27   :  { %p1741_p2 = scmp.ne.s32.totalorder %s2004_s9, %s1740_s28  ;;  %p1744_p3 = scmp.lt.u32.totalorder %s1740_s28, %s2004_s9 }
  0x29   :  { %p1746_p4 = pnand %p1744_p3, %p1741_p2 }
  0x2b   :  { %1749 = shalt.err (!%p1746_p4)
}
  0x2c   :  { %s1750_s2 = scalar_lea.vmem %s65_s21, 2048  ;;  %p1755_p6 = scmp.lt.s32.totalorder %s65_s21, %s65_s21 }
  0x2d   :  { %p1751_p5 = scmp.ne.s32.totalorder %s65_s21, %s1750_s2  ;;  %p1756_p7 = scmp.lt.s32.totalorder %s1750_s2, %s1750_s2 }
  0x2f   :  { %p1757_p8 = por %p1756_p7, %p1755_p6 }
  0x31   :  { %p1758_p9 = pnand %p1757_p8, %p1751_p5 }
  0x33   :  { %1761 = shalt.err (!%p1758_p9)
}
  0x34   :  { %70 = dma.hbm_to_vmem [thread:$0]  %s2004_s9, 2048, %s65_s21, [#allocation5], %s1791_s18, %s1791_s18, %s1792_s19  }
  0x35   :  { %s1762_s22 = scalar_lea.hbm %s2006_s11, 2048 }
  0x36   :  { %p1763_p10 = scmp.ne.s32.totalorder %s2006_s11, %s1762_s22  ;;  %p1766_p11 = scmp.lt.u32.totalorder %s1762_s22, %s2006_s11 }
  0x38   :  { %p1768_p12 = pnand %p1766_p11, %p1763_p10 }
  0x3a   :  { %1771 = shalt.err (!%p1768_p12)
}
  0x3b   :  { %s1772_s30 = scalar_lea.vmem %s1901_s24, 2048  ;;  %p1777_p0 = scmp.lt.s32.totalorder %s1901_s24, %s1901_s24 }
  0x3c   :  { %p1773_p13 = scmp.ne.s32.totalorder %s1901_s24, %s1772_s30  ;;  %p1778_p1 = scmp.lt.s32.totalorder %s1772_s30, %s1772_s30 }
  0x3e   :  { %p1779_p2 = por %p1778_p1, %p1777_p0 }
  0x40   :  { %p1780_p3 = pnand %p1779_p2, %p1773_p13 }
  0x42   :  { %1783 = shalt.err (!%p1780_p3)
}
  0x43   :  { %84 = dma.hbm_to_vmem [thread:$0]  %s2006_s11, 2048, %s1901_s24, [#allocation8], %s1794_s8, %s1794_s8, %s1795_s26  }
  0x44   :  { %1784 = dma.done.wait [#allocation3], 6144  }
  0x45   :  { %1785 = vsyncadd [#allocation3], 4294961152 }
  0x46   :  { %1786 = dma.done.wait [#allocation5], 4096  }
  0x47   :  { %1787 = vsyncadd [#allocation5], 4294963200 }
  0x48   :  { %1788 = dma.done.wait [#allocation8], 2048  }
  0x49   :  { %1789 = vsyncadd [#allocation8], 4294965248  ;;  %v1564_v0 = vld [vmem:[#allocation2 + $0x40] sm:$0xff]   ;;  %v1568_v4 = vld [vmem:[#allocation2 + $0x48] sm:$0xff]   ;;  %v1798_v58 = vmov 0.0   ;;  %vm763_vm0 = vcmask 1043456  }
  0x4a   :  { %v1565_v1 = vld [vmem:[#allocation2] sm:$0xff]   ;;  %1428 = vmatprep.subr.bf16.mxu0 %v1564_v0  ;;  %v1569_v5 = vld [vmem:[#allocation2 + $0x8] sm:$0xff]   ;;  %v1572_v8 = vld [vmem:[#allocation2 + $0x50] sm:$0xff]   ;;  %vm1799_vm1 = vmmov 0   ;;  %vm759_vm2 = vcmask 64512  }
  0x4b   :  { %v1566_v2 = vld [vmem:[#allocation2 + $0xc0] sm:$0xff]   ;;  %1429 = vmatpush3.bf16.msra.mxu0 %v1565_v1  ;;  %v1570_v6 = vld [vmem:[#allocation2 + $0xc8] sm:$0xff]   ;;  %v1573_v9 = vld [vmem:[#allocation2 + $0x10] sm:$0xff]  }
  0x4c   :  { %v1567_v3 = vld [vmem:[#allocation2 + $0x80] sm:$0xff]   ;;  %1450 = vmatprep.subr.bf16.mxu1 %v1566_v2  ;;  %1430 = vmatprep.subr.bf16.mxu0 %v1568_v4  ;;  %v1571_v7 = vld [vmem:[#allocation2 + $0x88] sm:$0xff]   ;;  %v1574_v10 = vld [vmem:[#allocation2 + $0xd0] sm:$0xff]  }
  0x4d   :  { %1451 = vmatpush3.bf16.msra.mxu1 %v1567_v3  ;;  %v1575_v11 = vld [vmem:[#allocation2 + $0x90] sm:$0xff]   ;;  %v1576_v12 = vld [vmem:[#allocation2 + $0x58] sm:$0xff]   ;;  %v1580_v16 = vld [vmem:[#allocation2 + $0x60] sm:$0xff]  }
  0x4e   :  { %1452 = vmatprep.subr.bf16.mxu1 %v1570_v6  ;;  %v1577_v13 = vld [vmem:[#allocation2 + $0x18] sm:$0xff]   ;;  %v1581_v17 = vld [vmem:[#allocation2 + $0x20] sm:$0xff]   ;;  %v1584_v20 = vld [vmem:[#allocation2 + $0x68] sm:$0xff]  }
  0x4f   :  { %1431 = vmatpush3.bf16.msra.mxu0 %v1569_v5  ;;  %v1578_v14 = vld [vmem:[#allocation2 + $0xd8] sm:$0xff]   ;;  %v1582_v18 = vld [vmem:[#allocation2 + $0xe0] sm:$0xff]   ;;  %v1585_v21 = vld [vmem:[#allocation2 + $0x28] sm:$0xff]  }
  0x50   :  { %1432 = vmatprep.subr.bf16.mxu0 %v1572_v8  ;;  %v1579_v15 = vld [vmem:[#allocation2 + $0x98] sm:$0xff]   ;;  %v1583_v19 = vld [vmem:[#allocation2 + $0xa0] sm:$0xff]   ;;  %v1586_v22 = vld [vmem:[#allocation2 + $0xe8] sm:$0xff]  }
  0x51   :  { %1453 = vmatpush3.bf16.msra.mxu1 %v1571_v7  ;;  %v1587_v23 = vld [vmem:[#allocation2 + $0xa8] sm:$0xff]   ;;  %v1588_v24 = vld [vmem:[#allocation2 + $0x70] sm:$0xff]   ;;  %v1592_v28 = vld [vmem:[#allocation2 + $0x78] sm:$0xff]  }
  0x52   :  { %1454 = vmatprep.subr.bf16.mxu1 %v1574_v10  ;;  %v1589_v25 = vld [vmem:[#allocation2 + $0x30] sm:$0xff]   ;;  %v1593_v29 = vld [vmem:[#allocation2 + $0x38] sm:$0xff]   ;;  %v100_v31 = vld [vmem:[%s1995_s0] sm:$0xff] }
  0x53   :  { %1433 = vmatpush3.bf16.msra.mxu0 %v1573_v9  ;;  %v1590_v26 = vld [vmem:[#allocation2 + $0xf0] sm:$0xff]   ;;  %v1594_v30 = vld [vmem:[#allocation2 + $0xf8] sm:$0xff]   ;;  %v1314_v32 = vcombine.low %v100_v31, %v100_v31  ;;  %v1315_v33 = vcombine.high %v100_v31, %v100_v31  ;;  %v1598_v35 = vld [vmem:[#allocation2 + $0x140] sm:$0xff]  }
  0x54   :  { %1434 = vmatprep.subr.bf16.mxu0 %v1576_v12  ;;  %v1591_v27 = vld [vmem:[#allocation2 + $0xb0] sm:$0xff]   ;;  %v1597_v34 = vld [vmem:[#allocation2 + $0xb8] sm:$0xff]   ;;  %v101_v36 = vld [vmem:[%s1995_s0 + $0x8] sm:$0xff] }
  0x55   :  { %1455 = vmatpush3.bf16.msra.mxu1 %v1575_v11  ;;  %547 = vmatprep.mubr.bf16.mxu0 %v1315_v33  ;;  %v1316_v37 = vcombine.low %v101_v36, %v101_v36  ;;  %v1317_v38 = vcombine.high %v101_v36, %v101_v36  ;;  %v1601_v39 = vld [vmem:[#allocation2 + $0x100] sm:$0xff]   ;;  %v1602_v40 = vld [vmem:[#allocation2 + $0x148] sm:$0xff]   ;;  %v1604_v42 = vld [vmem:[#allocation2 + $0x150] sm:$0xff]  }
  0x56   :  { %1456 = vmatprep.subr.bf16.mxu1 %v1578_v14  ;;  %v1603_v41 = vld [vmem:[#allocation2 + $0x108] sm:$0xff]   ;;  %v1605_v43 = vld [vmem:[#allocation2 + $0x110] sm:$0xff]   ;;  %v1606_v44 = vld [vmem:[#allocation2 + $0x158] sm:$0xff]  }
  0x57   :  { %1435 = vmatpush3.bf16.msra.mxu0 %v1577_v13  ;;  %587 = vmatprep.mubr.bf16.mxu1 %v1317_v38  ;;  %v1607_v45 = vld [vmem:[#allocation2 + $0x118] sm:$0xff]   ;;  %v1608_v46 = vld [vmem:[#allocation2 + $0x160] sm:$0xff]   ;;  %v1610_v48 = vld [vmem:[#allocation2 + $0x168] sm:$0xff]  }
  0x58   :  { %1436 = vmatprep.subr.bf16.mxu0 %v1580_v16  ;;  %v1609_v47 = vld [vmem:[#allocation2 + $0x120] sm:$0xff]   ;;  %v102_v49 = vld [vmem:[%s1995_s0 + $0x10] sm:$0xff]  ;;  %v1611_v51 = vld [vmem:[#allocation2 + $0x128] sm:$0xff]  }
  0x59   :  { %1457 = vmatpush3.bf16.msra.mxu1 %v1579_v15  ;;  %v1319_v50 = vcombine.high %v102_v49, %v102_v49  ;;  %v1612_v52 = vld [vmem:[#allocation2 + $0x170] sm:$0xff]   ;;  %v1614_v54 = vld [vmem:[#allocation2 + $0x178] sm:$0xff]   ;;  %v1318_v56 = vcombine.low %v102_v49, %v102_v49  ;;  %v1618_v57 = vld [vmem:[%s1999_s4] sm:$0xff]  }
  0x5a   :  { %1458 = vmatprep.subr.bf16.mxu1 %v1582_v18  ;;  %v1613_v53 = vld [vmem:[#allocation2 + $0x130] sm:$0xff]   ;;  %v1615_v55 = vld [vmem:[#allocation2 + $0x138] sm:$0xff]   ;;  %v1619_v59 = vld [vmem:[%s1999_s4 + $0x8] sm:$0xff]  }
  0x5b   :  { %1437 = vmatpush3.bf16.msra.mxu0 %v1581_v17  ;;  %v1620_v60 = vld [vmem:[%s1999_s4 + $0x10] sm:$0xff]   ;;  %v1621_v61 = vld [vmem:[%s1999_s4 + $0x18] sm:$0xff]   ;;  %v1622_v62 = vld [vmem:[%s1999_s4 + $0x20] sm:$0xff]  }
  0x5c   :  { %1438 = vmatprep.subr.bf16.mxu0 %v1584_v20  ;;  %v1623_v63 = vld [vmem:[%s1999_s4 + $0x28] sm:$0xff]   ;;  %v751_v0 = vld [vmem:[%s2001_s6] sm:$0xf]  ;;  %v1624_v2 = vld [vmem:[%s1999_s4 + $0x30] sm:$0xff]  }
  0x5d   :  { %1459 = vmatpush3.bf16.msra.mxu1 %v1583_v19  ;;  %v765_v1 = vsel %vm763_vm0, %v751_v0, 0  ;;  %v750_v3 = vld [vmem:[%s1996_s1] sm:$0xf]  ;;  %v1625_v4 = vld [vmem:[%s1999_s4 + $0x38] sm:$0xff]   ;;  %v1628_v5 = vld [vmem:[#allocation6 + $0x4] ss:$8 sps:$4 sm:$0xff]  }
  0x5e   :  { %1460 = vmatprep.subr.bf16.mxu1 %v1586_v22  ;;  %v1632_v6 = vld [vmem:[#allocation4] ss:$8 sps:$4 sm:$0xff]   ;;  %v1634_v7 = vld [vmem:[#allocation4 + $0x4] ss:$8 sps:$4 sm:$0xff]   ;;  %v1638_v8 = vld [vmem:[#allocation4 + $0x10] ss:$8 sps:$4 sm:$0xff]  }
  0x5f   :  { %1439 = vmatpush3.bf16.msra.mxu0 %v1585_v21  ;;  %v1640_v9 = vld [vmem:[#allocation4 + $0x14] ss:$8 sps:$4 sm:$0xff]   ;;  %v1644_v10 = vld [vmem:[#allocation4 + $0x20] ss:$8 sps:$4 sm:$0xff]   ;;  %v1646_v11 = vld [vmem:[#allocation4 + $0x24] ss:$8 sps:$4 sm:$0xff]  }
  0x60   :  { %1440 = vmatprep.subr.bf16.mxu0 %v1588_v24  ;;  %v1650_v12 = vld [vmem:[#allocation4 + $0x30] ss:$8 sps:$4 sm:$0xff]   ;;  %v1652_v13 = vld [vmem:[#allocation4 + $0x34] ss:$8 sps:$4 sm:$0xff]   ;;  %v1656_v14 = vld [vmem:[#allocation4 + $0x40] ss:$8 sps:$4 sm:$0xff]  }
  0x61   :  { %1461 = vmatpush3.bf16.msra.mxu1 %v1587_v23  ;;  %v1658_v15 = vld [vmem:[#allocation4 + $0x44] ss:$8 sps:$4 sm:$0xff]   ;;  %v1662_v16 = vld [vmem:[#allocation4 + $0x50] ss:$8 sps:$4 sm:$0xff]   ;;  %v1664_v18 = vld [vmem:[#allocation4 + $0x54] ss:$8 sps:$4 sm:$0xff]  }
  0x62   :  { %1462 = vmatprep.subr.bf16.mxu1 %v1590_v26  ;;  %v1313_v19 = vld [vmem:[%s1998_s3] ss:$0 sm:$0xff]  ;;  %v1655_v49 = vld [vmem:[#allocation6 + $0x54] ss:$8 sps:$4 sm:$0xff]  }
  0x63   :  { %1441 = vmatpush3.bf16.msra.mxu0 %v1589_v25 }
  0x64   :  { %1442 = vmatprep.subr.bf16.mxu0 %v1592_v28 }
  0x65   :  { %1463 = vmatpush3.bf16.msra.mxu1 %v1591_v27 }
  0x66   :  { %1464 = vmatprep.subr.bf16.mxu1 %v1594_v30 }
  0x67   :  { %1443 = vmatpush3.bf16.msra.mxu0 %v1593_v29 }
  0x68   :  { %1472 = vmatprep.subr.bf16.mxu0 %v1598_v35 }
  0x69   :  { %1465 = vmatpush3.bf16.msra.mxu1 %v1597_v34 }
  0x6a   :  { %548 = vmatmul.mubr.bf16.vlgmr.msra.gmra.mrb[0].mxu0 %v1314_v32  ;;  %1527 = vmatprep.subr.bf16.mxu1 %v1798_v58 }
  0x6b   :  { %1473 = vmatpush3.bf16.msra.mxu0 %v1601_v39  ;;  %627 = vmatprep.mubr.bf16.mxu0 %v1319_v50  ;;  %v1626_v39 = vld [vmem:[#allocation6] ss:$8 sps:$4 sm:$0xff]   ;;  %v1653_v50 = vld [vmem:[#allocation6 + $0x50] ss:$8 sps:$4 sm:$0xff]  }
  0x6c   :  { %588 = vmatmul.mubr.bf16.vlgmr.msra.gmra.mrb[0].mxu1 %v1316_v37  ;;  %1474 = vmatprep.subr.bf16.mxu0 %v1602_v40 }
  0x6d   :  { %1528 = vmatpush3.bf16.msra.mxu1 %v1618_v57  ;;  %1543 = vmatprep.mubr.msk.bf16.mxu1 %vm1799_vm1, %v1798_v58 }
  0x6e   :  { %1529 = vmatprep.subr.bf16.mxu1 %v1798_v58 }
  0x6f   :  { %1475 = vmatpush3.bf16.msra.mxu0 %v1603_v41  ;;  %v1631_v41 = vld [vmem:[#allocation6 + $0x14] ss:$8 sps:$4 sm:$0xff]  }
  0x70   :  { %1476 = vmatprep.subr.bf16.mxu0 %v1604_v42  ;;  %v1629_v42 = vld [vmem:[#allocation6 + $0x10] ss:$8 sps:$4 sm:$0xff]  }
  0x71   :  { %1530 = vmatpush3.bf16.msra.mxu1 %v1619_v59 }
  0x72   :  { %1531 = vmatprep.subr.bf16.mxu1 %v1798_v58 }
  0x73   :  { %1477 = vmatpush3.bf16.msra.mxu0 %v1605_v43  ;;  %v1637_v43 = vld [vmem:[#allocation6 + $0x24] ss:$8 sps:$4 sm:$0xff]  }
  0x74   :  { %1478 = vmatprep.subr.bf16.mxu0 %v1606_v44  ;;  %v1635_v44 = vld [vmem:[#allocation6 + $0x20] ss:$8 sps:$4 sm:$0xff]  }
  0x75   :  { %1532 = vmatpush3.bf16.msra.mxu1 %v1620_v60 }
  0x76   :  { %1533 = vmatprep.subr.bf16.mxu1 %v1798_v58 }
  0x77   :  { %1479 = vmatpush3.bf16.msra.mxu0 %v1607_v45  ;;  %v1643_v45 = vld [vmem:[#allocation6 + $0x34] ss:$8 sps:$4 sm:$0xff]  }
  0x78   :  { %1480 = vmatprep.subr.bf16.mxu0 %v1608_v46  ;;  %v1641_v46 = vld [vmem:[#allocation6 + $0x30] ss:$8 sps:$4 sm:$0xff]  }
  0x79   :  { %1534 = vmatpush3.bf16.msra.mxu1 %v1621_v61 }
  0x7a   :  { %1535 = vmatprep.subr.bf16.mxu1 %v1798_v58 }
  0x7b   :  { %1481 = vmatpush3.bf16.msra.mxu0 %v1609_v47  ;;  %v1649_v47 = vld [vmem:[#allocation6 + $0x44] ss:$8 sps:$4 sm:$0xff]  }
  0x7c   :  { %1482 = vmatprep.subr.bf16.mxu0 %v1610_v48  ;;  %v1647_v48 = vld [vmem:[#allocation6 + $0x40] ss:$8 sps:$4 sm:$0xff]  }
  0x7d   :  { %1536 = vmatpush3.bf16.msra.mxu1 %v1622_v62  ;;  %v1670_v62 = vld [vmem:[#allocation4 + $0x64] ss:$8 sps:$4 sm:$0xff]  }
  0x7e   :  { %1537 = vmatprep.subr.bf16.mxu1 %v1798_v58 }
  0x7f   :  { %1483 = vmatpush3.bf16.msra.mxu0 %v1611_v51  ;;  %v1661_v51 = vld [vmem:[#allocation6 + $0x64] ss:$8 sps:$4 sm:$0xff]  }
  0x80   :  { %1484 = vmatprep.subr.bf16.mxu0 %v1612_v52  ;;  %v1659_v52 = vld [vmem:[#allocation6 + $0x60] ss:$8 sps:$4 sm:$0xff]  }
  0x81   :  { %1538 = vmatpush3.bf16.msra.mxu1 %v1623_v63  ;;  %v1668_v63 = vld [vmem:[#allocation4 + $0x60] ss:$8 sps:$4 sm:$0xff]  }
  0x82   :  { %1539 = vmatprep.subr.bf16.mxu1 %v1798_v58 }
  0x83   :  { %1485 = vmatpush3.bf16.msra.mxu0 %v1613_v53  ;;  %v1667_v53 = vld [vmem:[#allocation6 + $0x74] ss:$8 sps:$4 sm:$0xff]  }
  0x84   :  { %1486 = vmatprep.subr.bf16.mxu0 %v1614_v54  ;;  %v1665_v54 = vld [vmem:[#allocation6 + $0x70] ss:$8 sps:$4 sm:$0xff]  }
  0x85   :  { %1540 = vmatpush3.bf16.msra.mxu1 %v1624_v2  ;;  %v1800_v2 = vmov 0  }
  0x86   :  { %1541 = vmatprep.subr.bf16.mxu1 %v1798_v58 }
  0x87   :  { %1487 = vmatpush3.bf16.msra.mxu0 %v1615_v55  ;;  %v1377_v55 = vld [vmem:[%s2002_s7] ss:$0 sm:$0xff] }
  0x88   :  { %1547 = vmatprep.subr.bf16.mxu0 %v1798_v58 }
  0x89   :  { %1542 = vmatpush3.bf16.msra.mxu1 %v1625_v4  ;;  %v1671_v4 = vld [vmem:[#allocation4 + $0x70] ss:$8 sps:$4 sm:$0xff]  }
  0x8a   :  { %628 = vmatmul.mubr.bf16.vlgmr.msra.gmra.mrb[4].mxu0 %v1318_v56  ;;  %927 = vmatprep.subr.bf16.mxu1 %v1628_v5  ;;  %v1674_v5 = vld [vmem:[#allocation7 + $0x40] sm:$0xff]  }
  0x8b   :  { %1548 = vmatpush3.bf16.msra.mxu0 %v765_v1  ;;  %1549 = vmatprep.mubr.msk.bf16.mxu0 %vm1799_vm1, %v1798_v58 }
  0x8c   :  { %1048 = vmatprep.subr.bf16.mxu0 %v1634_v7  ;;  %v1676_v7 = vld [vmem:[#allocation7 + $0x48] sm:$0xff]  }
  0x92   :  { %1550 = vmatmul.mubr.msk.bf16.vlgmr.msra.gmra.mrb[8].mxu0 %vm759_vm2, %v750_v3  ;;  %v1673_v3 = vld [vmem:[#allocation4 + $0x74] ss:$8 sps:$4 sm:$0xff]  }
  0x93   :  { %1049 = vmatpush1.bf16.msra.mxu0 %v1632_v6  ;;  %1080 = vmatprep.mubr.bf16.mxu0 %v1800_v2  ;;  %v1675_v6 = vld [vmem:[#allocation7] sm:$0xff]  }
  0x94   :  { %1050 = vmatprep.subr.bf16.mxu0 %v1640_v9  ;;  %v1678_v9 = vld [vmem:[#allocation7 + $0x50] sm:$0xff]  }
  0x97   :  { %1051 = vmatpush1.bf16.msra.mxu0 %v1638_v8  ;;  %v1677_v8 = vld [vmem:[#allocation7 + $0x8] sm:$0xff]  }
  0x98   :  { %1052 = vmatprep.subr.bf16.mxu0 %v1646_v11  ;;  %v1680_v11 = vld [vmem:[#allocation7 + $0x58] sm:$0xff]  }
  0x9b   :  { %1053 = vmatpush1.bf16.msra.mxu0 %v1644_v10  ;;  %v1679_v10 = vld [vmem:[#allocation7 + $0x10] sm:$0xff]  }
  0x9c   :  { %1054 = vmatprep.subr.bf16.mxu0 %v1652_v13  ;;  %v1682_v13 = vld [vmem:[#allocation7 + $0x60] sm:$0xff]  }
  0x9f   :  { %1055 = vmatpush1.bf16.msra.mxu0 %v1650_v12  ;;  %v1681_v12 = vld [vmem:[#allocation7 + $0x18] sm:$0xff]  }
  0xa0   :  { %1056 = vmatprep.subr.bf16.mxu0 %v1658_v15  ;;  %v1368_v15 = vld [vmem:[%s2000_s5] ss:$0 sm:$0xff] }
  0xa3   :  { %1057 = vmatpush1.bf16.msra.mxu0 %v1656_v14  ;;  %v1683_v14 = vld [vmem:[#allocation7 + $0x20] sm:$0xff]  }
  0xa4   :  { %1058 = vmatprep.subr.bf16.mxu0 %v1664_v18 }
  0xa7   :  { %1059 = vmatpush1.bf16.msra.mxu0 %v1662_v16 }
  0xa8   :  { %1060 = vmatprep.subr.bf16.mxu0 %v1670_v62 }
  0xab   :  { %1061 = vmatpush1.bf16.msra.mxu0 %v1668_v63 }
  0xac   :  { %1062 = vmatprep.subr.bf16.mxu0 %v1673_v3 }
  0xaf   :  { %1063 = vmatpush1.bf16.msra.mxu0 %v1671_v4 }
 0x13d   :  { %v1444_v17 = vpop.f32.mrb[0].mxu0 }
 0x13e   :  { %v1445_v20 = vpop.f32.mrb[1].mxu0 }
 0x13f   :  { %v1446_v21 = vadd.f32 %v1445_v20, %v1444_v17  ;;  %v1447_v22 = vpop.f32.mrb[2].mxu0  ;;  %v1466_v23 = vpop.f32.mrb[0].mxu1 }
 0x140   :  { %v1448_v24 = vpop.f32.mrb[3].mxu0  ;;  %v1467_v25 = vpop.f32.mrb[1].mxu1 }
 0x141   :  { %v550_v26 = vadd.f32 %v1446_v21, %v1313_v19  ;;  %v1468_v27 = vadd.f32 %v1467_v25, %v1466_v23  ;;  %v1469_v28 = vpop.f32.mrb[2].mxu1 }
 0x142   :  { %v1470_v29 = vpop.f32.mrb[3].mxu1  ;;  %v1684_v28 = vld [vmem:[#allocation7 + $0x68] sm:$0xff]  }
 0x143   :  { %v590_v30 = vadd.f32 %v1468_v27, %v550_v26  ;;  %v1685_v29 = vld [vmem:[#allocation7 + $0x28] sm:$0xff]  }
 0x15d   :  { %v1488_v31 = vpop.f32.mrb[4].mxu0 }
 0x15e   :  { %v1489_v32 = vpop.f32.mrb[5].mxu0 }
 0x15f   :  { %v1490_v33 = vadd.f32 %v1489_v32, %v1488_v31  ;;  %v1491_v34 = vpop.f32.mrb[6].mxu0  ;;  %v1687_v31 = vld [vmem:[#allocation7 + $0x30] sm:$0xff]   ;;  %v1688_v32 = vld [vmem:[#allocation7 + $0x78] sm:$0xff]  }
 0x160   :  { %v1492_v35 = vpop.f32.mrb[7].mxu0  ;;  %v1091_v34 = vlaneseq }
 0x161   :  { %v630_v36 = vadd.f32 %v1490_v33, %v590_v30  ;;  %v1686_v30 = vld [vmem:[#allocation7 + $0x70] sm:$0xff]   ;;  %v1689_v33 = vld [vmem:[#allocation7 + $0x38] sm:$0xff]  }
 0x162   :  { %v1092_v35 = vshrl.u32 %v1091_v34, 7  ;;  %v1287_v4 = vand.u32 127, %v1091_v34 }
 0x163   :  { %vm635_vm3 = vcmp.gt.f32.partialorder %v630_v36, 0.0  ;;  %v636_v37 = vmul.f32 0.1, %v630_v36 }
 0x164   :  { %vm1288_vm8 = vcmp.lt.s32.totalorder %v1287_v4, 4 }
 0x165   :  { %v637_v38 = vsel %vm635_vm3, %v630_v36, %v636_v37  ;;  %v801_v56 = vpop.f32.mrb[8].mxu0  ;;  %v1093_v36 = vsub.s32 0, %v1092_v35  ;;  %v1089_v37 = vld [vmem:[%s2005_s10] sm:$0x3] }
 0x166   :  { %v638_v40 = vpack.c.bf16 %v637_v38, %v637_v38  ;;  %v802_v57 = vadd.f32 %v1377_v55, %v801_v56  ;;  %v1551_v58 = vpop.f32.mrb[9].mxu0  ;;  %v1097_v38 = vsub.s32 1, %v1092_v35  ;;  %v1411_v56 = vld [vmem:[%s2007_s12] ss:$0 sm:$0xff] }
 0x167   :  { %v804_v59 = vpop.f32.mrb[10].mxu0 }
 0x168   :  { %1544 = vmatmul.mubr.bf16.vlgmr.msra.gmra.mrb[4].mxu1 %v638_v40  ;;  %vm827_vm4 = vcmp.gt.f32.partialorder %v802_v57, 0.0  ;;  %v828_v60 = vmul.f32 0.1, %v802_v57  ;;  %v1552_v61 = vpop.f32.mrb[11].mxu0 }
 0x169   :  { %928 = vmatpush1.bf16.msra.mxu1 %v1626_v39  ;;  %959 = vmatprep.mubr.bf16.mxu1 %v1800_v2  ;;  %v1094_v39 = vrot.slane %v1089_v37, %v1093_v36 }
 0x16a   :  { %929 = vmatprep.subr.bf16.mxu1 %v1631_v41  ;;  %v829_v0 = vsel %vm827_vm4, %v802_v57, %v828_v60  ;;  %v1098_v41 = vrot.slane %v1089_v37, %v1097_v38 }
 0x16b   :  { %v830_v1 = vpack.c.bf16 %v829_v0, %v829_v0 }
 0x16d   :  { %930 = vmatpush1.bf16.msra.mxu1 %v1629_v42 }
 0x16e   :  { %931 = vmatprep.subr.bf16.mxu1 %v1637_v43 }
 0x171   :  { %932 = vmatpush1.bf16.msra.mxu1 %v1635_v44 }
 0x172   :  { %933 = vmatprep.subr.bf16.mxu1 %v1643_v45 }
 0x175   :  { %934 = vmatpush1.bf16.msra.mxu1 %v1641_v46 }
 0x176   :  { %935 = vmatprep.subr.bf16.mxu1 %v1649_v47 }
 0x179   :  { %936 = vmatpush1.bf16.msra.mxu1 %v1647_v48 }
 0x17a   :  { %937 = vmatprep.subr.bf16.mxu1 %v1655_v49 }
 0x17d   :  { %938 = vmatpush1.bf16.msra.mxu1 %v1653_v50 }
 0x17e   :  { %939 = vmatprep.subr.bf16.mxu1 %v1661_v51 }
 0x181   :  { %940 = vmatpush1.bf16.msra.mxu1 %v1659_v52 }
 0x182   :  { %941 = vmatprep.subr.bf16.mxu1 %v1667_v53 }
 0x185   :  { %942 = vmatpush1.bf16.msra.mxu1 %v1665_v54 }
 0x186   :  { %1505 = vmatprep.subr.bf16.mxu1 %v1674_v5 }
 0x188   :  { %960 = vmatmul.mubr.bf16.vlgmr.msra.gmra.mrb[8].mxu1 %v830_v1 }
 0x189   :  { %1506 = vmatpush3.bf16.msra.mxu1 %v1675_v6 }
 0x18a   :  { %1507 = vmatprep.subr.bf16.mxu1 %v1676_v7 }
 0x18d   :  { %1508 = vmatpush3.bf16.msra.mxu1 %v1677_v8 }
 0x18e   :  { %1509 = vmatprep.subr.bf16.mxu1 %v1678_v9 }
 0x191   :  { %1510 = vmatpush3.bf16.msra.mxu1 %v1679_v10 }
 0x192   :  { %1511 = vmatprep.subr.bf16.mxu1 %v1680_v11 }
 0x195   :  { %1512 = vmatpush3.bf16.msra.mxu1 %v1681_v12 }
 0x196   :  { %1513 = vmatprep.subr.bf16.mxu1 %v1682_v13 }
 0x199   :  { %1514 = vmatpush3.bf16.msra.mxu1 %v1683_v14 }
 0x19a   :  { %1515 = vmatprep.subr.bf16.mxu1 %v1684_v28 }
 0x19d   :  { %1516 = vmatpush3.bf16.msra.mxu1 %v1685_v29 }
 0x19e   :  { %1517 = vmatprep.subr.bf16.mxu1 %v1686_v30 }
 0x1a1   :  { %1518 = vmatpush3.bf16.msra.mxu1 %v1687_v31 }
 0x1a2   :  { %1519 = vmatprep.subr.bf16.mxu1 %v1688_v32 }
 0x1a5   :  { %1520 = vmatpush3.bf16.msra.mxu1 %v1689_v33 }
 0x23b   :  { %v744_v16 = vpop.f32.mrb[4].mxu1 }
 0x23c   :  { %v745_v17 = vadd.f32 %v1368_v15, %v744_v16  ;;  %v1545_v18 = vpop.f32.mrb[5].mxu1 }
 0x23d   :  { %v747_v19 = vpop.f32.mrb[6].mxu1 }
 0x23e   :  { %vm807_vm5 = vcmp.gt.f32.partialorder %v745_v17, 0.0  ;;  %v808_v20 = vmul.f32 0.1, %v745_v17  ;;  %v1546_v21 = vpop.f32.mrb[7].mxu1 }
 0x240   :  { %v809_v22 = vsel %vm807_vm5, %v745_v17, %v808_v20 }
 0x241   :  { %v810_v23 = vpack.c.bf16 %v809_v22, %v809_v22 }
 0x243   :  { %1081 = vmatmul.mubr.bf16.vlgmr.msra.gmra.mrb[12].mxu0 %v810_v23 }
 0x25b   :  { %v961_v24 = vpop.f32.mrb[8].mxu1 }
 0x25c   :  { %v963_v25 = vpop.f32.mrb[9].mxu1 }
 0x25d   :  { %v965_v26 = vpop.f32.mrb[10].mxu1 }
 0x25e   :  { %v966_v27 = vpop.f32.mrb[11].mxu1 }
 0x316   :  { %v1082_v40 = vpop.f32.mrb[12].mxu0 }
 0x317   :  { %v1083_v42 = vadd.f32 %v1082_v40, %v961_v24  ;;  %v1084_v43 = vpop.f32.mrb[13].mxu0 }
 0x318   :  { %v1085_v44 = vadd.f32 %v1084_v43, %v963_v25  ;;  %v1086_v45 = vpop.f32.mrb[14].mxu0 }
 0x319   :  { %v1101_v46 = vadd.f32 %v1094_v39, %v1083_v42  ;;  %v1087_v47 = vpop.f32.mrb[15].mxu0 }
 0x31a   :  { %v1102_v48 = vadd.f32 %v1098_v41, %v1085_v44 }
 0x31b   :  { %vm1103_vm6 = vcmp.gt.f32.partialorder %v1101_v46, 0.0  ;;  %v1105_v49 = vmul.f32 0.1, %v1101_v46 }
 0x31c   :  { %v1106_v50 = vmul.f32 0.1, %v1102_v48  ;;  %vm1104_vm7 = vcmp.gt.f32.partialorder %v1102_v48, 0.0 }
 0x31d   :  { %v1107_v51 = vsel %vm1103_vm6, %v1101_v46, %v1105_v49 }
 0x31e   :  { %v1108_v52 = vsel %vm1104_vm7, %v1102_v48, %v1106_v50  ;;  %v1109_v54 = vpack.c.bf16 %v1107_v51, %v1107_v51 }
 0x31f   :  { %v1110_v53 = vpack.c.bf16 %v1108_v52, %v1108_v52 }
 0x321   :  { %1278 = vmatprep.mubr.bf16.mxu1 %v1110_v53 }
 0x322   :  { %1279 = vmatmul.mubr.bf16.vlgmr.msra.gmra.mrb[12].mxu1 %v1109_v54 }
 0x3f5   :  { %v1521_v55 = vpop.f32.mrb[12].mxu1 }
 0x3f6   :  { %v1522_v57 = vpop.f32.mrb[13].mxu1 }
 0x3f7   :  { %v1523_v58 = vadd.f32 %v1522_v57, %v1521_v55  ;;  %v1524_v59 = vpop.f32.mrb[14].mxu1 }
 0x3f8   :  { %v1525_v60 = vpop.f32.mrb[15].mxu1 }
 0x3f9   :  { %v1281_v61 = vadd.f32 %v1523_v58, %v1411_v56 }
 0x3fb   :  { %v1291_v62 = vmin.f32 %v1281_v61, 20.0  ;;  %vm1290_vm10 = vcmp.gt.f32.partialorder %v1281_v61, 20.0 }
 0x3fd   :  { %v1292_v63 = vmul.f32 1.442695, %v1291_v62 }
 0x3ff   :  { %1690 = vpow2.f32 %v1292_v63 }
 0x409   :  { %v1691_v0 = vpop.eup %1690 }
 0x40a   :  { %v1294_v1 = vadd.f32 1.0, %v1691_v0  ;;  %v1297_v2 = vmul.f32 -0.5, %v1691_v0  ;;  %v1300_v5 = vand.u32 2147483647, %v1691_v0 }
 0x40c   :  { %1692 = vlog2.f32 %v1294_v1  ;;  %v1298_v3 = vadd.f32 1.0, %v1297_v2  ;;  %vm1301_vm9 = vcmp.lt.f32.partialorder %v1300_v5, 0.0004427343 }
 0x40d   :  { %1694 = vtanh.f32 %v1281_v61 }
 0x40e   :  { %v1299_v8 = vmul.f32 %v1691_v0, %v1298_v3 }
 0x416   :  { %v1693_v6 = vpop.eup %1692 }
 0x417   :  { %v1296_v7 = vmul.f32 0.6931472, %v1693_v6  ;;  %v1695_v10 = vpop.eup %1694 }
 0x419   :  { %v1302_v9 = vsel %vm1301_vm9, %v1299_v8, %v1296_v7 }
 0x41a   :  { %v1303_v11 = vsel %vm1290_vm10, %v1281_v61, %v1302_v9 }
 0x41b   :  { %v1304_v12 = vsel %vm1288_vm8, %v1695_v10, %v1303_v11 }
 0x41c   :  { %1305 = vst [vmem:[%s2008_s13] sm:$0xff] %v1304_v12 }
 0x41d   :  { %1310 = vsyncpa [#allocation3], 1 }
 0x41e   :  { %1311 = vsyncpa [#allocation5], 1 }
 0x41f   :  { %1312 = vsyncpa [#allocation8], 1 }

</bundles_post_ra>
